<compile_context>
chip_gen: v5e
topology: v5e:2x2
jax: 0.10.0
libtpu: 0.0.40
codegen_flags: <defaults>
</compile_context>

<pallas_src>
import functools

import jax
import jax.numpy as jnp
from jax import lax
from jax.experimental import pallas as pl
from jax.experimental.pallas import tpu as pltpu

EPS = 1e-5
_MiB = 1024 * 1024
_TARGET_BLOCK_BYTES = 4 * _MiB  # per-step input-block size target


# ----------------------------------------------------------------------------
# Kernel bodies
# ----------------------------------------------------------------------------
def _row_stats(x_f32, inv_d):
    """One-pass per-row mean and rsqrt(var+eps). x_f32: (rows, D)."""
    s = jnp.sum(x_f32, axis=-1, keepdims=True)
    sq = jnp.sum(x_f32 * x_f32, axis=-1, keepdims=True)
    mean = s * inv_d
    var = jnp.maximum(sq * inv_d - mean * mean, 0.0)
    return mean, lax.rsqrt(var + EPS)


def _seg_stats(x_f32, seg, inv_d):
    """Segmented (per-original-row) stats via block-diagonal matmul on MXU.

    x_f32: (rows, k*D); seg: (k*D, k*D) block diagonal of ones(D, D).
    Result is broadcast back to every lane of its segment."""
    s = jnp.dot(x_f32, seg, preferred_element_type=jnp.float32)
    sq = jnp.dot(x_f32 * x_f32, seg, preferred_element_type=jnp.float32)
    mean = s * inv_d
    var = jnp.maximum(sq * inv_d - mean * mean, 0.0)
    return mean, lax.rsqrt(var + EPS)


def _ln_kernel(x_ref, w_ref, b_ref, o_ref):
    x = x_ref[...].astype(jnp.float32)
    mean, inv = _row_stats(x, 1.0 / x.shape[-1])
    o_ref[...] = ((x - mean) * (inv * w_ref[...]) + b_ref[...]).astype(o_ref.dtype)


def _ln_kernel_nobias(x_ref, w_ref, o_ref):
    x = x_ref[...].astype(jnp.float32)
    mean, inv = _row_stats(x, 1.0 / x.shape[-1])
    o_ref[...] = ((x - mean) * (inv * w_ref[...])).astype(o_ref.dtype)


def _ln_kernel_folded(x_ref, w_ref, b_ref, seg_ref, o_ref, *, inv_d):
    x = x_ref[...].astype(jnp.float32)
    mean, inv = _seg_stats(x, seg_ref[...], inv_d)
    o_ref[...] = ((x - mean) * (inv * w_ref[...]) + b_ref[...]).astype(o_ref.dtype)


def _ln_kernel_folded_nobias(x_ref, w_ref, seg_ref, o_ref, *, inv_d):
    x = x_ref[...].astype(jnp.float32)
    mean, inv = _seg_stats(x, seg_ref[...], inv_d)
    o_ref[...] = ((x - mean) * (inv * w_ref[...])).astype(o_ref.dtype)


# ----------------------------------------------------------------------------
# Tiling heuristic
# ----------------------------------------------------------------------------
def _tile_config(n, d, dtype):
    """Pick (block_rows, vmem_limit_bytes) for an (n, d) LayerNorm."""
    itemsize = jnp.dtype(dtype).itemsize
    # Native sublane packing: 8 rows for 4-byte, 16 for bf16, 32 for 8-bit.
    sublane = max(8, 32 // itemsize)

    # Physical VMEM per TensorCore: 128 MiB (v5e/v6e), 64 MiB (v7x).
    try:
        vmem_cap = int(pltpu.get_tpu_info().vmem_capacity_bytes)
    except Exception:  # conservative fallback (v7x per-TC size)
        vmem_cap = 64 * _MiB
    # Ceiling on the scoped request (compiler headroom retained).
    vmem_ceiling = int(min(vmem_cap * 3 // 4, 96 * _MiB))

    # Per-row VMEM cost: double-buffered input + output tiles (input dtype)
    # plus ~2 f32 tile temporaries for the one-pass statistics.
    per_row_bytes = 4 * d * itemsize + 2 * d * 4
    max_rows = vmem_ceiling // max(per_row_bytes, 1)  # no extra //2 here

    # Bytes-based target: aim for a ~4 MiB input block (past the ~85% HBM
    # roofline knee), bounded by what fits in the VMEM budget.
    target_rows = max(_TARGET_BLOCK_BYTES // max(d * itemsize, 1), sublane)
    block_rows = min(max_rows, target_rows)

    n_rounded = -(-n // sublane) * sublane
    block_rows = min(block_rows, n_rounded)

    # Ensure >= 2 grid blocks when the problem is big enough (v7x: 2 TCs).
    if block_rows >= n_rounded and n_rounded >= 2 * sublane:
        block_rows = n_rounded // 2
    block_rows = max(sublane, (block_rows // sublane) * sublane)

    # Request only what the chosen tiles need, plus headroom for params /
    # the small segment matrix / scheduling slack.
    need = block_rows * per_row_bytes + 4 * _MiB
    vmem_limit = int(min(max(need, 8 * _MiB), vmem_ceiling))
    return block_rows, vmem_limit


# ----------------------------------------------------------------------------
# Wrapper
# ----------------------------------------------------------------------------
@functools.partial(jax.jit, static_argnames=("block_rows",))
def layer_norm(x, weight, bias=None, *, block_rows=None):
    """Matches torch.nn.functional.layer_norm(x, (D,), weight, bias, 1e-5)."""
    orig_shape = x.shape
    d = orig_shape[-1]
    x2 = x.reshape(-1, d)
    n = x2.shape[0]

    # Pre-cast params to f32 once; kernel math is f32.
    w = weight.reshape(1, d).astype(jnp.float32)
    b = None if bias is None else bias.reshape(1, d).astype(jnp.float32)

    # Lane-dense fold for small D: pack k = 128 // D consecutive rows into the
    # lane dimension so block last-dim is a multiple of 128 (unmasked stores,
    # full vreg utilization).  Row-major reshape keeps element order, so the
    # final reshape back to orig_shape is exact.
    fold = 128 // d if (d < 128 and 128 % d == 0) else 1
    use_fold = fold > 1 and n % fold == 0 and n >= fold
    if use_fold:
        d_eff = fold * d
        n_eff = n // fold
        x2 = x2.reshape(n_eff, d_eff)
        w = jnp.tile(w, (1, fold))
        if b is not None:
            b = jnp.tile(b, (1, fold))
        seg_idx = jnp.arange(d_eff, dtype=jnp.int32) // d
        seg = (seg_idx[:, None] == seg_idx[None, :]).astype(jnp.float32)
    else:
        n_eff, d_eff = n, d
        seg = None

    rows, vmem_limit = _tile_config(n_eff, d_eff, x.dtype)
    if block_rows is not None:
        rows = block_rows

    # Ragged last block handled by Pallas (OOB reads padded, OOB writes
    # discarded); per-row stats are independent, so padded rows are inert.
    grid = (pl.cdiv(n_eff, rows),)

    row_spec = pl.BlockSpec((rows, d_eff), lambda i: (i, 0))
    param_spec = pl.BlockSpec((1, d_eff), lambda i: (0, 0))

    if use_fold:
        seg_spec = pl.BlockSpec((d_eff, d_eff), lambda i: (0, 0))
        if b is None:
            kernel = functools.partial(_ln_kernel_folded_nobias, inv_d=1.0 / d)
            in_specs = [row_spec, param_spec, seg_spec]
            args = (x2, w, seg)
        else:
            kernel = functools.partial(_ln_kernel_folded, inv_d=1.0 / d)
            in_specs = [row_spec, param_spec, param_spec, seg_spec]
            args = (x2, w, b, seg)
    else:
        if b is None:
            kernel = _ln_kernel_nobias
            in_specs = [row_spec, param_spec]
            args = (x2, w)
        else:
            kernel = _ln_kernel
            in_specs = [row_spec, param_spec, param_spec]
            args = (x2, w, b)

    out = pl.pallas_call(
        kernel,
        out_shape=jax.ShapeDtypeStruct((n_eff, d_eff), x.dtype),
        grid_spec=pltpu.PrefetchScalarGridSpec(
            num_scalar_prefetch=0,
            grid=grid,
            in_specs=in_specs,
            out_specs=row_spec,
        ),
        compiler_params=pltpu.CompilerParams(
            dimension_semantics=("parallel",),
            vmem_limit_bytes=vmem_limit,
        ),
    )(*args)

    return out.reshape(orig_shape)


# ----------------------------------------------------------------------------
# Reference + tests
# ----------------------------------------------------------------------------
def _reference_layer_norm(x, weight, bias):
    xf = x.astype(jnp.float32)
    mean = jnp.mean(xf, axis=-1, keepdims=True)
    var = jnp.mean((xf - mean) ** 2, axis=-1, keepdims=True)
    y = (xf - mean) / jnp.sqrt(var + EPS)
    y = y * weight.astype(jnp.float32)
    if bias is not None:
        y = y + bias.astype(jnp.float32)
    return y.astype(x.dtype)


if __name__ == "__main__":
    key = jax.random.PRNGKey(0)
    batch, seq, hidden = 2, 8, 32

    kx, kw, kb, kr, kx2 = jax.random.split(key, 5)
    x = jax.random.normal(kx, (batch, seq, hidden), dtype=jnp.float32)

    # Module default init: weight=ones, bias=zeros.
    weight = jnp.ones((hidden,), dtype=jnp.float32)
    bias = jnp.zeros((hidden,), dtype=jnp.float32)

    # D < 128 -> lane-dense folded path (segmented-sum matmul on MXU).
    out = jax.block_until_ready(layer_norm(x, weight, bias))
    ref = _reference_layer_norm(x, weight, bias)
    assert out.shape == x.shape and out.dtype == x.dtype
    assert jnp.allclose(out, ref, atol=1e-5, rtol=1e-5)

    # bias=False path of the module (separate kernel, no zero-bias stream).
    out_nb = jax.block_until_ready(layer_norm(x, weight, None))
    ref_nb = _reference_layer_norm(x, weight, None)
    assert jnp.allclose(out_nb, ref_nb, atol=1e-5, rtol=1e-5)

    # Non-trivial params + row count not divisible by the fold factor:
    # exercises the per-row fallback path and the ragged last block.
    w_r = 1.0 + 0.1 * jax.random.normal(kw, (hidden,), dtype=jnp.float32)
    b_r = 0.1 * jax.random.normal(kb, (hidden,), dtype=jnp.float32)
    x_rag = jax.random.normal(kr, (3, 7, hidden), dtype=jnp.float32)
    out_rag = jax.block_until_ready(layer_norm(x_rag, w_r, b_r))
    ref_rag = _reference_layer_norm(x_rag, w_r, b_r)
    assert jnp.allclose(out_rag, ref_rag, atol=1e-5, rtol=1e-5)

    # Lane-aligned D >= 128: standard per-row one-pass path, unmasked stores.
    d_big = 128
    x_big = jax.random.normal(kx2, (2, 16, d_big), dtype=jnp.float32)
    w_big = 1.0 + 0.1 * jax.random.normal(kw, (d_big,), dtype=jnp.float32)
    b_big = 0.1 * jax.random.normal(kb, (d_big,), dtype=jnp.float32)
    out_big = jax.block_until_ready(layer_norm(x_big, w_big, b_big))
    ref_big = _reference_layer_norm(x_big, w_big, b_big)
    assert jnp.allclose(out_big, ref_big, atol=1e-5, rtol=1e-5)

    print("KERNEL_OK")
</pallas_src>

<mosaic_0001>
module attributes {stable_mosaic.version = 11 : i64} {
  func.func @_ln_kernel_folded(%arg0: i32, %arg1: memref<8x128xf32, #tpu.memory_space<vmem>>, %arg2: memref<1x128xf32, #tpu.memory_space<vmem>>, %arg3: memref<1x128xf32, #tpu.memory_space<vmem>>, %arg4: memref<128x128xf32, #tpu.memory_space<vmem>>, %arg5: memref<8x128xf32, #tpu.memory_space<vmem>>) attributes {dimension_semantics = [#tpu.dimension_semantics<parallel>], iteration_bounds = array<i64: 1>, scalar_prefetch = 0 : i64, scratch_operands = 0 : i64, tpu.core_type = #tpu.core_type<tc>, window_params = [{transform_indices = @transform_0, window_bounds = array<i64: 8, 128>}, {pipeline_mode = #tpu.pipeline_mode<synchronous>, transform_indices = @transform_1, window_bounds = array<i64: 1, 128>}, {pipeline_mode = #tpu.pipeline_mode<synchronous>, transform_indices = @transform_2, window_bounds = array<i64: 1, 128>}, {pipeline_mode = #tpu.pipeline_mode<synchronous>, transform_indices = @transform_3, window_bounds = array<i64: 128, 128>}, {transform_indices = @transform_4, window_bounds = array<i64: 8, 128>}]} {
    %c0 = arith.constant 0 : index
    %c0_0 = arith.constant 0 : index
    %0 = vector.load %arg1[%c0, %c0_0] : memref<8x128xf32, #tpu.memory_space<vmem>>, vector<8x128xf32>
    %c0_1 = arith.constant 0 : index
    %c0_2 = arith.constant 0 : index
    %1 = vector.load %arg4[%c0_1, %c0_2] : memref<128x128xf32, #tpu.memory_space<vmem>>, vector<128x128xf32>
    %cst = arith.constant dense<0.000000e+00> : vector<8x128xf32>
    %2 = tpu.matmul %0, %1, %cst {dimension_numbers = #tpu.dot_dimension_numbers<[1], [0], [0], [1], [0, 0, 1, 1], [], []>} : vector<8x128xf32>, vector<128x128xf32>, vector<8x128xf32> -> vector<8x128xf32>
    %3 = arith.mulf %0, %0 : vector<8x128xf32>
    %cst_3 = arith.constant dense<0.000000e+00> : vector<8x128xf32>
    %4 = tpu.matmul %3, %1, %cst_3 {dimension_numbers = #tpu.dot_dimension_numbers<[1], [0], [0], [1], [0, 0, 1, 1], [], []>} : vector<8x128xf32>, vector<128x128xf32>, vector<8x128xf32> -> vector<8x128xf32>
    %cst_4 = arith.constant 3.125000e-02 : f32
    %5 = vector.broadcast %cst_4 : f32 to vector<8x128xf32>
    %6 = arith.mulf %2, %5 : vector<8x128xf32>
    %cst_5 = arith.constant 3.125000e-02 : f32
    %7 = vector.broadcast %cst_5 : f32 to vector<8x128xf32>
    %8 = arith.mulf %4, %7 : vector<8x128xf32>
    %9 = arith.mulf %6, %6 : vector<8x128xf32>
    %10 = arith.subf %8, %9 : vector<8x128xf32>
    %cst_6 = arith.constant 0.000000e+00 : f32
    %11 = vector.broadcast %cst_6 : f32 to vector<8x128xf32>
    %12 = arith.maximumf %10, %11 : vector<8x128xf32>
    %cst_7 = arith.constant 9.99999974E-6 : f32
    %13 = vector.broadcast %cst_7 : f32 to vector<8x128xf32>
    %14 = arith.addf %12, %13 : vector<8x128xf32>
    %15 = math.rsqrt %14 : vector<8x128xf32>
    %16 = arith.subf %0, %6 : vector<8x128xf32>
    %c0_8 = arith.constant 0 : index
    %c0_9 = arith.constant 0 : index
    %17 = vector.load %arg2[%c0_8, %c0_9] : memref<1x128xf32, #tpu.memory_space<vmem>>, vector<1x128xf32>
    %18 = vector.broadcast %17 : vector<1x128xf32> to vector<8x128xf32>
    %19 = arith.mulf %15, %18 : vector<8x128xf32>
    %20 = arith.mulf %16, %19 : vector<8x128xf32>
    %c0_10 = arith.constant 0 : index
    %c0_11 = arith.constant 0 : index
    %21 = vector.load %arg3[%c0_10, %c0_11] : memref<1x128xf32, #tpu.memory_space<vmem>>, vector<1x128xf32>
    %22 = vector.broadcast %21 : vector<1x128xf32> to vector<8x128xf32>
    %23 = arith.addf %20, %22 : vector<8x128xf32>
    %c0_12 = arith.constant 0 : index
    %c0_13 = arith.constant 0 : index
    %24 = vector.load %arg5[%c0_12, %c0_13] : memref<8x128xf32, #tpu.memory_space<vmem>>, vector<8x128xf32>
    tpu.vector_store %arg5[%c0_12, %c0_13], %23 {strides = array<i32>} : memref<8x128xf32, #tpu.memory_space<vmem>>, vector<8x128xf32>,
    return
  }
  func.func @transform_0(%arg0: i32) -> (i32, i32) {
    %c0_i32 = arith.constant 0 : i32
    %c0_i32_0 = arith.constant 0 : i32
    return %arg0, %c0_i32 : i32, i32
  }
  func.func @transform_1(%arg0: i32) -> (i32, i32) {
    %c0_i32 = arith.constant 0 : i32
    %c0_i32_0 = arith.constant 0 : i32
    %c0_i32_1 = arith.constant 0 : i32
    return %c0_i32, %c0_i32_0 : i32, i32
  }
  func.func @transform_2(%arg0: i32) -> (i32, i32) {
    %c0_i32 = arith.constant 0 : i32
    %c0_i32_0 = arith.constant 0 : i32
    %c0_i32_1 = arith.constant 0 : i32
    return %c0_i32, %c0_i32_0 : i32, i32
  }
  func.func @transform_3(%arg0: i32) -> (i32, i32) {
    %c0_i32 = arith.constant 0 : i32
    %c0_i32_0 = arith.constant 0 : i32
    %c0_i32_1 = arith.constant 0 : i32
    return %c0_i32, %c0_i32_0 : i32, i32
  }
  func.func @transform_4(%arg0: i32) -> (i32, i32) {
    %c0_i32 = arith.constant 0 : i32
    %c0_i32_0 = arith.constant 0 : i32
    return %arg0, %c0_i32 : i32, i32
  }
}

</mosaic_0001>

<bundles_post_ra>
// kernel: layer_norm.1
= control target key start
LH: loop header
LB: loop body
LE: loop exit
PB: predicated region body
PF: predicated region fallthrough
CT: control target
= control target key end

     0   :  { %s234_s0 = inlined_call_operand.vmem [shape: f32[4,128], index: 0, kind: input, shape index: {}]   ;;  %s235_s1 = inlined_call_operand.vmem [shape: f32[1,128], index: 1, kind: input, shape index: {}]   ;;  %s236_s2 = inlined_call_operand.vmem [shape: f32[1,128], index: 2, kind: input, shape index: {}]   ;;  %s237_s3 = inlined_call_operand.vmem [shape: f32[128,128], index: 3, kind: input, shape index: {}]   ;;  %s238_s4 = inlined_call_operand.vmem [shape: f32[4,128], index: 4, kind: output, shape index: {}]  }
   0x1   :  { %v33_v0 = vld [vmem:[%s237_s3 + $0x78] sm:$0xff]  ;;  %v32_v1 = vld [vmem:[%s237_s3 + $0x70] sm:$0xff]  ;;  %v31_v2 = vld [vmem:[%s237_s3 + $0x68] sm:$0xff] }
   0x2   :  { %34 = vmatpush.msra.mxu0 %v33_v0  ;;  %55 = vmatpush.msra.mxu1 %v33_v0  ;;  %v30_v3 = vld [vmem:[%s237_s3 + $0x60] sm:$0xff]  ;;  %v29_v4 = vld [vmem:[%s237_s3 + $0x58] sm:$0xff]  ;;  %v28_v5 = vld [vmem:[%s237_s3 + $0x50] sm:$0xff] }
   0x3   :  { %v27_v6 = vld [vmem:[%s237_s3 + $0x48] sm:$0xff]  ;;  %v26_v7 = vld [vmem:[%s237_s3 + $0x40] sm:$0xff]  ;;  %v25_v8 = vld [vmem:[%s237_s3 + $0x38] sm:$0xff] }
   0x4   :  { %35 = vmatpush.msra.mxu0 %v32_v1  ;;  %56 = vmatpush.msra.mxu1 %v32_v1  ;;  %v24_v9 = vld [vmem:[%s237_s3 + $0x30] sm:$0xff]  ;;  %v23_v10 = vld [vmem:[%s237_s3 + $0x28] sm:$0xff]  ;;  %v22_v11 = vld [vmem:[%s237_s3 + $0x20] sm:$0xff] }
   0x5   :  { %v21_v12 = vld [vmem:[%s237_s3 + $0x18] sm:$0xff]  ;;  %v20_v13 = vld [vmem:[%s237_s3 + $0x10] sm:$0xff]  ;;  %v17_v14 = vld [vmem:[%s234_s0] sm:$0xff] }
   0x6   :  { %36 = vmatpush.msra.mxu0 %v31_v2  ;;  %57 = vmatpush.msra.mxu1 %v31_v2  ;;  %v19_v15 = vld [vmem:[%s237_s3 + $0x8] sm:$0xff]  ;;  %v18_v16 = vld [vmem:[%s237_s3] sm:$0xff]  ;;  %v54_v17 = vmul.f32 %v17_v14, %v17_v14 }
   0x7   :  { %v145_v31 = vld [vmem:[%s235_s1] ss:$0 sm:$0xff] }
   0x8   :  { %37 = vmatpush.msra.mxu0 %v30_v3  ;;  %58 = vmatpush.msra.mxu1 %v30_v3  ;;  %v146_v36 = vld [vmem:[%s236_s2] ss:$0 sm:$0xff] }
   0xa   :  { %38 = vmatpush.msra.mxu0 %v29_v4  ;;  %59 = vmatpush.msra.mxu1 %v29_v4 }
   0xc   :  { %39 = vmatpush.msra.mxu0 %v28_v5  ;;  %60 = vmatpush.msra.mxu1 %v28_v5 }
   0xe   :  { %40 = vmatpush.msra.mxu0 %v27_v6  ;;  %61 = vmatpush.msra.mxu1 %v27_v6 }
  0x10   :  { %41 = vmatpush.msra.mxu0 %v26_v7  ;;  %62 = vmatpush.msra.mxu1 %v26_v7 }
  0x12   :  { %42 = vmatpush.msra.mxu0 %v25_v8  ;;  %63 = vmatpush.msra.mxu1 %v25_v8 }
  0x14   :  { %43 = vmatpush.msra.mxu0 %v24_v9  ;;  %64 = vmatpush.msra.mxu1 %v24_v9 }
  0x16   :  { %44 = vmatpush.msra.mxu0 %v23_v10  ;;  %65 = vmatpush.msra.mxu1 %v23_v10 }
  0x18   :  { %45 = vmatpush.msra.mxu0 %v22_v11  ;;  %66 = vmatpush.msra.mxu1 %v22_v11 }
  0x1a   :  { %46 = vmatpush.msra.mxu0 %v21_v12  ;;  %67 = vmatpush.msra.mxu1 %v21_v12 }
  0x1c   :  { %47 = vmatpush.msra.mxu0 %v20_v13  ;;  %68 = vmatpush.msra.mxu1 %v20_v13 }
  0x1e   :  { %48 = vmatpush.msra.mxu0 %v19_v15  ;;  %69 = vmatpush.msra.mxu1 %v19_v15 }
  0x20   :  { %49 = vmatpush.msra.mxu0 %v18_v16  ;;  %70 = vmatpush.msra.mxu1 %v18_v16 }
  0x21   :  { %50 = vmatmul.f32.vlgmr.msra.gmra.mxu0 %v17_v14  ;;  %71 = vmatmul.f32.vlgmr.msra.gmra.mxu1 %v54_v17 }
  0x9e   :  { %v51_v18 = vpop.f32.mrf.mxu0  ;;  %v72_v19 = vpop.f32.mrf.mxu1 }
  0x9f   :  { %v75_v20 = vmul.f32 0.03125, %v51_v18  ;;  %v76_v21 = vmul.f32 0.03125, %v72_v19 }
  0xa1   :  { %v77_v22 = vmul.f32 %v75_v20, %v75_v20  ;;  %v91_v34 = vsub.f32 %v17_v14, %v75_v20 }
  0xa3   :  { %v78_v23 = vsub.f32 %v76_v21, %v77_v22 }
  0xa5   :  { %v79_v24 = vmax.f32 %v78_v23, 0.0 }
  0xa7   :  { %v80_v25 = vadd.f32 1e-05, %v79_v24 }
  0xa9   :  { %147 = vrsqrt.f32 %v80_v25  ;;  %vm87_vm1 = vweird.f32 %v80_v25 }
  0xaf   :  { %v148_v26 = vpop.eup %147 }
  0xb0   :  { %v82_v27 = vmul.f32 %v148_v26, %v80_v25  ;;  %vm88_vm0 = vweird.f32 %v148_v26 }
  0xb1   :  { %vm89_vm2 = vmor %vm87_vm1, %vm88_vm0 }
  0xb2   :  { %v83_v28 = vmul.f32 %v148_v26, %v82_v27 }
  0xb4   :  { %v84_v29 = vmul.f32 0.5, %v83_v28 }
  0xb6   :  { %v85_v30 = vsub.f32 1.5, %v84_v29 }
  0xb8   :  { %v86_v32 = vmul.f32 %v148_v26, %v85_v30 }
  0xba   :  { %v90_v33 = vsel %vm89_vm2, %v148_v26, %v86_v32 }
  0xbb   :  { %v96_v35 = vmul.f32 %v145_v31, %v90_v33 }
  0xbd   :  { %v97_v37 = vmul.f32 %v96_v35, %v91_v34 }
  0xbf   :  { %v102_v38 = vadd.f32 %v146_v36, %v97_v37 }
  0xc1   :  { %103 = vst [vmem:[#allocation2] sm:$0xff] %v102_v38 }
  0xc8   :  { %v122_v39 = vld [vmem:[#allocation2] sm:$0xf] }
  0xc9   :  { %123 = vst [vmem:[%s238_s4] sm:$0xf] %v122_v39 }

</bundles_post_ra>
